<compile_context>
chip_gen: v5e
topology: v5e:2x2
jax: 0.10.0
libtpu: 0.0.40
codegen_flags: <defaults>
</compile_context>

<pallas_src>
import functools

import jax
import jax.numpy as jnp
from jax import lax
from jax.experimental import pallas as pl
from jax.experimental.pallas import tpu as pltpu


# bf16 MXU inputs, f32 accumulation, f32 elementwise math everywhere.
_COMPUTE_DTYPE = jnp.bfloat16

# Scoped-VMEM budget: generous for the tiles picked below, yet leaves headroom
# on v7x (64 MiB physical VMEM); v5e/v6e have 128 MiB.
_VMEM_LIMIT = 48 * 1024 * 1024


def _pick_tile(total, cap, *, min_tiles=1, align=1):
    """Largest divisor of `total` that is <= cap, is a multiple of `align`
    (or equals `total`, which is always layout-legal), and leaves at least
    `min_tiles` tiles."""
    best = None
    for t in range(1, total + 1):
        if total % t:
            continue
        if t > cap:
            break
        if total // t < min_tiles:
            break
        if t % align and t != total:
            continue
        best = t
    return best if best is not None else total


# ----------------------------------------------------------------------------
# Kernel 1: stand-in backbone = 1x1 conv + ReLU + global-average-pool (sum).
#   grid = (B, HW // TS); spatial axis is the trailing reduction axis, the
#   output block (GAP partial sum) stays resident across it.
# ----------------------------------------------------------------------------
def conv_gap_kernel(x_ref, wc_ref, bc_ref, out_ref):
    s_idx = pl.program_id(1)

    @pl.when(s_idx == 0)
    def _():
        out_ref[...] = jnp.zeros(out_ref.shape, jnp.float32)

    xb = x_ref[0].astype(_COMPUTE_DTYPE)         # (C, TS)
    wc = wc_ref[...].astype(_COMPUTE_DTYPE)      # (C, Cmid)
    # One MXU contraction per grid step, M = TS (large), K = C.
    h = lax.dot_general(xb, wc,
                        dimension_numbers=(((0,), (0,)), ((), ())),
                        preferred_element_type=jnp.float32)       # (TS, Cmid)
    h = jnp.maximum(h + bc_ref[...], 0.0)
    out_ref[0] += jnp.sum(h, axis=0, keepdims=True)               # GAP partial


# ----------------------------------------------------------------------------
# Kernel 2: projection neck (fc -> ReLU -> fc) + L2 normalization.
#   Full-M (batch-tile) MXU tiles; these matmuls are tiny, kept in f32.
# ----------------------------------------------------------------------------
def project_kernel(p_ref, w1_ref, b1_ref, w2_ref, b2_ref, z_ref, *, inv_hw):
    pooled = p_ref[...] * inv_hw                                  # (TB, Cmid)
    h1 = jnp.dot(pooled, w1_ref[...],
                 preferred_element_type=jnp.float32) + b1_ref[...]
    h1 = jnp.maximum(h1, 0.0)
    zz = jnp.dot(h1, w2_ref[...],
                 preferred_element_type=jnp.float32) + b2_ref[...]
    # l2_normalize: z / (||z||_2 + 1e-10)   (matches SimCLR.l2_normalize)
    norm = jnp.sqrt(jnp.sum(zz * zz, axis=1, keepdims=True)) + 1e-10
    z_ref[...] = zz / norm


# ----------------------------------------------------------------------------
# Kernel 3: NT-Xent loss with the whole z resident in VMEM.
#   grid = (B2N // TR,); per row tile: s = z_rows @ z.T (bf16 in, f32 acc),
#   mask the diagonal, single-pass logsumexp, positive = s[i, i^1],
#   per-tile partial loss sum written as a scalar to SMEM.
# ----------------------------------------------------------------------------
def ntxent_kernel(zr_ref, zc_ref, loss_ref, *, temperature, tr):
    i = pl.program_id(0)
    zr = zr_ref[...].astype(_COMPUTE_DTYPE)                       # (TR, D)
    s = lax.dot_general(zr, zc_ref[...],
                        dimension_numbers=(((1,), (1,)), ((), ())),
                        preferred_element_type=jnp.float32)       # (TR, B2N)

    row_g = i * tr + lax.broadcasted_iota(jnp.int32, s.shape, 0)
    col_g = lax.broadcasted_iota(jnp.int32, s.shape, 1)
    pair_g = jnp.bitwise_xor(row_g, 1)                            # pair(i) = i ^ 1

    pos = jnp.sum(jnp.where(col_g == pair_g, s, 0.0),
                  axis=1, keepdims=True)                          # (TR, 1)

    inv_t = 1.0 / temperature
    logits = s * inv_t
    masked = jnp.where(col_g == row_g, -1e30, logits)             # mask self only
    m = jnp.max(masked, axis=1, keepdims=True)
    l = jnp.sum(jnp.exp(masked - m), axis=1, keepdims=True)
    lse = m + jnp.log(l)
    # Including the positive in the LSE == CE over [pos, negs] (ContrastiveHead).
    row_loss = lse - pos * inv_t                                  # (TR, 1)
    loss_ref[0, 0] = jnp.sum(row_loss)                            # tile partial sum


# ----------------------------------------------------------------------------
# Wrappers
# ----------------------------------------------------------------------------
def conv_gap(x, w_conv, b_conv, *, ts_cap=2048):
    b, c, hw = x.shape
    cmid = w_conv.shape[1]
    ts = _pick_tile(hw, ts_cap, align=128)
    pooled_sum = pl.pallas_call(
        conv_gap_kernel,
        out_shape=jax.ShapeDtypeStruct((b, 1, cmid), jnp.float32),
        grid_spec=pltpu.PrefetchScalarGridSpec(
            num_scalar_prefetch=0,
            grid=(b, hw // ts),
            in_specs=[
                pl.BlockSpec((1, c, ts), lambda i, s: (i, 0, s)),   # activation
                pl.BlockSpec((c, cmid), lambda i, s: (0, 0)),       # w_conv
                pl.BlockSpec((1, cmid), lambda i, s: (0, 0)),       # b_conv
            ],
            out_specs=pl.BlockSpec((1, 1, cmid), lambda i, s: (i, 0, 0)),
        ),
        compiler_params=pltpu.CompilerParams(
            dimension_semantics=("parallel", "arbitrary"),
            vmem_limit_bytes=_VMEM_LIMIT,
        ),
        cost_estimate=pl.CostEstimate(
            flops=2 * b * hw * c * cmid,
            transcendentals=0,
            bytes_accessed=(b * c * hw + c * cmid + cmid + b * cmid) * 4,
        ),
    )(x, w_conv, b_conv)
    return pooled_sum.reshape(b, cmid)


def project(pooled_sum, params, *, hw):
    b, cmid = pooled_sum.shape
    hid = params["w1"].shape[1]
    d = params["w2"].shape[1]
    tb = _pick_tile(b, 256, min_tiles=2, align=8)
    kernel = functools.partial(project_kernel, inv_hw=1.0 / float(hw))
    return pl.pallas_call(
        kernel,
        out_shape=jax.ShapeDtypeStruct((b, d), jnp.float32),
        grid_spec=pltpu.PrefetchScalarGridSpec(
            num_scalar_prefetch=0,
            grid=(b // tb,),
            in_specs=[
                pl.BlockSpec((tb, cmid), lambda i: (i, 0)),
                pl.BlockSpec((cmid, hid), lambda i: (0, 0)),
                pl.BlockSpec((1, hid), lambda i: (0, 0)),
                pl.BlockSpec((hid, d), lambda i: (0, 0)),
                pl.BlockSpec((1, d), lambda i: (0, 0)),
            ],
            out_specs=pl.BlockSpec((tb, d), lambda i: (i, 0)),
        ),
        compiler_params=pltpu.CompilerParams(
            dimension_semantics=("parallel",),
            vmem_limit_bytes=_VMEM_LIMIT,
        ),
        cost_estimate=pl.CostEstimate(
            flops=2 * b * (cmid * hid + hid * d),
            transcendentals=b,
            bytes_accessed=(b * cmid + cmid * hid + hid * d + hid + d + b * d) * 4,
        ),
    )(pooled_sum, params["w1"], params["b1"], params["w2"], params["b2"])


def get_embeddings(img, params):
    """img: (N, V, C, H, W) NCHW per view (PyTorch convention)."""
    n, v, c, h, w = img.shape
    b = n * v
    hw = h * w
    # NCHW is contiguous as (B, C, H*W): pure reshape, no HBM transpose.
    x = img.reshape(b, c, hw)
    pooled_sum = conv_gap(x, params["w_conv"], params["b_conv"])
    z = project(pooled_sum, params, hw=hw)
    return z


def ntxent_loss(z, temperature=0.1):
    b2n, d = z.shape
    # Row tile: as wide as sensible while keeping the (TR, B2N) f32 similarity
    # tile around <= 4 MiB and >= 2 tiles on the parallel axis (v7x: 2 TCs).
    cap = max(8, min(256, (4 * 1024 * 1024) // max(4 * b2n, 1)))
    tr = _pick_tile(b2n, cap, min_tiles=2, align=8)
    num_tiles = b2n // tr

    # Column operand: the whole z, cast once to bf16, VMEM-resident
    # (constant-index block -> DMA'd once).
    zc = z.astype(_COMPUTE_DTYPE)

    kernel = functools.partial(ntxent_kernel,
                               temperature=float(temperature), tr=tr)
    partial_sums = pl.pallas_call(
        kernel,
        out_shape=jax.ShapeDtypeStruct((num_tiles, 1), jnp.float32),
        grid_spec=pltpu.PrefetchScalarGridSpec(
            num_scalar_prefetch=0,
            grid=(num_tiles,),
            in_specs=[
                pl.BlockSpec((tr, d), lambda i: (i, 0)),      # row tile (f32)
                pl.BlockSpec((b2n, d), lambda i: (0, 0)),     # full z (bf16)
            ],
            out_specs=pl.BlockSpec((1, 1), lambda i: (i, 0),
                                   memory_space=pltpu.MemorySpace.SMEM),
        ),
        compiler_params=pltpu.CompilerParams(
            dimension_semantics=("parallel",),
            vmem_limit_bytes=_VMEM_LIMIT,
        ),
        cost_estimate=pl.CostEstimate(
            flops=2 * b2n * b2n * d,
            transcendentals=b2n * b2n + b2n,
            bytes_accessed=b2n * d * 4 + b2n * d * 2 + num_tiles * 4,
        ),
    )(z, zc)
    return jnp.sum(partial_sums) / b2n


def simclr_forward_train(img, params, temperature=0.1):
    z = get_embeddings(img, params)          # (2N, D), L2-normalized
    # TODO(synk): GatherLayer (all-gather) is identity on a single device.
    loss = ntxent_loss(z, temperature=temperature)
    return {"loss": loss}, z


# ----------------------------------------------------------------------------
# Pure-JAX reference (mirrors the kernels' bf16-input / f32-accumulate matmuls)
# ----------------------------------------------------------------------------
def _reference(img, params, temperature):
    cd = _COMPUTE_DTYPE
    n, v, c, h, w = img.shape
    b = n * v
    x = img.reshape(b, c, h * w)
    hmid = jnp.einsum("bcs,cm->bsm", x.astype(cd), params["w_conv"].astype(cd),
                      preferred_element_type=jnp.float32) + params["b_conv"][None]
    hmid = jnp.maximum(hmid, 0.0)
    pooled = jnp.mean(hmid, axis=1)
    h1 = jnp.maximum(pooled @ params["w1"] + params["b1"], 0.0)
    z = h1 @ params["w2"] + params["b2"]
    z = z / (jnp.linalg.norm(z, axis=1, keepdims=True) + 1e-10)

    zb = z.astype(cd)
    s = jnp.dot(zb, zb.T, preferred_element_type=jnp.float32)
    idx = jnp.arange(b)
    pos = s[idx, idx ^ 1][:, None]
    logits = s / temperature
    masked = jnp.where(jnp.eye(b, dtype=bool), -1e30, logits)
    m = jnp.max(masked, axis=1, keepdims=True)
    lse = m + jnp.log(jnp.sum(jnp.exp(masked - m), axis=1, keepdims=True))
    loss = jnp.mean(-pos / temperature + lse)
    return loss, z


if __name__ == "__main__":
    key = jax.random.PRNGKey(0)
    N, V, C, H, W = 8, 2, 4, 16, 16          # img: (N, 2, C, H, W), B = 2N = 16
    CMID, HID, D = 128, 128, 128             # lane-width (128) feature dims
    temperature = 0.1

    k_img, k_wc, k_bc, k_w1, k_b1, k_w2, k_b2 = jax.random.split(key, 7)
    img = jax.random.normal(k_img, (N, V, C, H, W), jnp.float32)
    params = dict(
        w_conv=jax.random.normal(k_wc, (C, CMID), jnp.float32) * 0.1,
        b_conv=jax.random.normal(k_bc, (1, CMID), jnp.float32) * 0.1,
        w1=jax.random.normal(k_w1, (CMID, HID), jnp.float32) * 0.1,
        b1=jax.random.normal(k_b1, (1, HID), jnp.float32) * 0.1,
        w2=jax.random.normal(k_w2, (HID, D), jnp.float32) * 0.1,
        b2=jax.random.normal(k_b2, (1, D), jnp.float32) * 0.1,
    )

    losses, z = simclr_forward_train(img, params, temperature=temperature)
    jax.block_until_ready(losses["loss"])

    loss_ref, z_ref = _reference(img, params, temperature)
    assert jnp.allclose(z, z_ref, atol=1e-3, rtol=1e-3), "embedding mismatch"
    assert jnp.allclose(losses["loss"], loss_ref, atol=5e-3, rtol=5e-3), "loss mismatch"

    print("KERNEL_OK")
</pallas_src>

<mosaic_0001>
module attributes {stable_mosaic.version = 11 : i64} {
  func.func @conv_gap_kernel(%arg0: i32, %arg1: i32, %arg2: memref<1x4x256xf32, #tpu.memory_space<vmem>>, %arg3: memref<4x128xf32, #tpu.memory_space<vmem>>, %arg4: memref<1x128xf32, #tpu.memory_space<vmem>>, %arg5: memref<1x1x128xf32, #tpu.memory_space<vmem>>) attributes {dimension_semantics = [#tpu.dimension_semantics<parallel>, #tpu.dimension_semantics<arbitrary>], iteration_bounds = array<i64: 16, 1>, scalar_prefetch = 0 : i64, scratch_operands = 0 : i64, tpu.core_type = #tpu.core_type<tc>, window_params = [{transform_indices = @transform_0, window_bounds = array<i64: 1, 4, 256>}, {pipeline_mode = #tpu.pipeline_mode<synchronous>, transform_indices = @transform_1, window_bounds = array<i64: 4, 128>}, {pipeline_mode = #tpu.pipeline_mode<synchronous>, transform_indices = @transform_2, window_bounds = array<i64: 1, 128>}, {transform_indices = @transform_3, window_bounds = array<i64: 1, 1, 128>}]} {
    %c0_i32 = arith.constant 0 : i32
    %0 = arith.cmpi eq, %arg1, %c0_i32 : i32
    %1 = arith.extui %0 : i1 to i32
    %c0_i32_0 = arith.constant 0 : i32
    %2 = arith.cmpi ne, %1, %c0_i32_0 : i32
    scf.if %2 {
      %cst_15 = arith.constant 0.000000e+00 : f32
      %22 = vector.broadcast %cst_15 : f32 to vector<1x1x128xf32>
      %c0_16 = arith.constant 0 : index
      %c0_17 = arith.constant 0 : index
      %c0_18 = arith.constant 0 : index
      %23 = vector.load %arg5[%c0_16, %c0_17, %c0_18] : memref<1x1x128xf32, #tpu.memory_space<vmem>>, vector<1x1x128xf32>
      tpu.vector_store %arg5[%c0_16, %c0_17, %c0_18], %22 {strides = array<i32>} : memref<1x1x128xf32, #tpu.memory_space<vmem>>, vector<1x1x128xf32>,
    } else {
    }
    %c0 = arith.constant 0 : index
    %c0_1 = arith.constant 0 : index
    %c0_2 = arith.constant 0 : index
    %3 = vector.load %arg2[%c0, %c0_1, %c0_2] : memref<1x4x256xf32, #tpu.memory_space<vmem>>, vector<1x4x256xf32>
    %4 = vector.shape_cast %3 : vector<1x4x256xf32> to vector<4x256xf32>
    %5 = arith.truncf %4 : vector<4x256xf32> to vector<4x256xbf16>
    %c0_3 = arith.constant 0 : index
    %c0_4 = arith.constant 0 : index
    %6 = vector.load %arg3[%c0_3, %c0_4] : memref<4x128xf32, #tpu.memory_space<vmem>>, vector<4x128xf32>
    %7 = arith.truncf %6 : vector<4x128xf32> to vector<4x128xbf16>
    %cst = arith.constant dense<0.000000e+00> : vector<256x128xf32>
    %8 = tpu.matmul %5, %7, %cst {dimension_numbers = #tpu.dot_dimension_numbers<[0], [0], [1], [1], [0, 1, 1, 1], [], []>} : vector<4x256xbf16>, vector<4x128xbf16>, vector<256x128xf32> -> vector<256x128xf32>
    %c0_5 = arith.constant 0 : index
    %c0_6 = arith.constant 0 : index
    %9 = vector.load %arg4[%c0_5, %c0_6] : memref<1x128xf32, #tpu.memory_space<vmem>>, vector<1x128xf32>
    %10 = vector.broadcast %9 : vector<1x128xf32> to vector<256x128xf32>
    %11 = arith.addf %8, %10 : vector<256x128xf32>
    %cst_7 = arith.constant 0.000000e+00 : f32
    %12 = vector.broadcast %cst_7 : f32 to vector<256x128xf32>
    %13 = arith.maximumf %11, %12 : vector<256x128xf32>
    %c0_8 = arith.constant 0 : index
    %c0_9 = arith.constant 0 : index
    %c0_10 = arith.constant 0 : index
    %14 = vector.load %arg5[%c0_8, %c0_9, %c0_10] : memref<1x1x128xf32, #tpu.memory_space<vmem>>, vector<1x1x128xf32>
    %15 = vector.shape_cast %14 : vector<1x1x128xf32> to vector<1x128xf32>
    %cst_11 = arith.constant dense<0.000000e+00> : vector<128xf32>
    %16 = vector.multi_reduction <add>, %13, %cst_11 [0] : vector<256x128xf32> to vector<128xf32>
    %17 = vector.shape_cast %16 : vector<128xf32> to vector<1x128xf32>
    %18 = arith.addf %15, %17 : vector<1x128xf32>
    %c0_12 = arith.constant 0 : index
    %c0_13 = arith.constant 0 : index
    %c0_14 = arith.constant 0 : index
    %19 = vector.load %arg5[%c0_12, %c0_13, %c0_14] : memref<1x1x128xf32, #tpu.memory_space<vmem>>, vector<1x1x128xf32>
    %20 = vector.shape_cast %19 : vector<1x1x128xf32> to vector<1x128xf32>
    %21 = vector.shape_cast %18 : vector<1x128xf32> to vector<1x1x128xf32>
    tpu.vector_store %arg5[%c0_12, %c0_13, %c0_14], %21 {strides = array<i32>} : memref<1x1x128xf32, #tpu.memory_space<vmem>>, vector<1x1x128xf32>,
    return
  }
  func.func @transform_0(%arg0: i32, %arg1: i32) -> (i32, i32, i32) {
    %c0_i32 = arith.constant 0 : i32
    %c0_i32_0 = arith.constant 0 : i32
    return %arg0, %c0_i32, %arg1 : i32, i32, i32
  }
  func.func @transform_1(%arg0: i32, %arg1: i32) -> (i32, i32) {
    %c0_i32 = arith.constant 0 : i32
    %c0_i32_0 = arith.constant 0 : i32
    %c0_i32_1 = arith.constant 0 : i32
    return %c0_i32, %c0_i32_0 : i32, i32
  }
  func.func @transform_2(%arg0: i32, %arg1: i32) -> (i32, i32) {
    %c0_i32 = arith.constant 0 : i32
    %c0_i32_0 = arith.constant 0 : i32
    %c0_i32_1 = arith.constant 0 : i32
    return %c0_i32, %c0_i32_0 : i32, i32
  }
  func.func @transform_3(%arg0: i32, %arg1: i32) -> (i32, i32, i32) {
    %c0_i32 = arith.constant 0 : i32
    %c0_i32_0 = arith.constant 0 : i32
    %c0_i32_1 = arith.constant 0 : i32
    return %arg0, %c0_i32, %c0_i32_0 : i32, i32, i32
  }
}

</mosaic_0001>

<bundles_post_ra>
// kernel: tpu_custom_call.1
= control target key start
LH: loop header
LB: loop body
LE: loop exit
PB: predicated region body
PF: predicated region fallthrough
CT: control target
= control target key end

     0   :  { %8 = vsyncpa [#allocation3], 0  ;;  %s1083_s0 = inlined_call_operand.hbm [shape: f32[16,4,256], index: 0, kind: input, shape index: {}]   ;;  %s1084_s1 = inlined_call_operand.hbm [shape: f32[4,128], index: 1, kind: input, shape index: {}]   ;;  %s1085_s2 = inlined_call_operand.vmem [shape: f32[1,128], index: 2, kind: input, shape index: {}]   ;;  %s1086_s3 = inlined_call_operand.hbm [shape: f32[16,1,128], index: 3, kind: output, shape index: {}]  }
   0x1   :  { %10 = vsyncpa [#allocation3 + $0x1], 0 }
   0x2   :  { %11 = vsyncpa [#allocation6], 0 }
   0x3   :  { %12 = vsyncpa [#allocation4], 0 }
   0x4   :  { %14 = vsyncpa [#allocation4 + $0x1], 0  ;;  %s858_s12 = smov 0   ;;  %s860_s13 = smov 0  }
   0x5   :  { %s862_s14 = smov 0   ;;  %s864_s15 = smov 0  }
   0x6   :  { %s866_s16 = smov 0   ;;  %s868_s17 = smov 0  }
   0x7 LB: > { %s579_s18 = sadd.s32 4294967295, %s834_s17   ;;  %s580_s19 = sadd.s32 4294967294, %s834_s17   ;;  %s834_s17 = sphi %s868_s17, %s20_s17   ;;  %s830_s16 = sphi %s866_s16, %s1098_s16   ;;  %s826_s15 = sphi %s864_s15, %s1097_s15   ;;  %s822_s14 = sphi %s862_s14, %s1096_s14   ;;  %s818_s13 = sphi %s860_s13, %s1095_s13   ;;  %s814_s12 = sphi %s858_s12, %s1094_s12  }
   0x8   : > { %p54_p0 = scmp.ne.s32.totalorder %s818_s13, %s814_s12  ;;  %p892_p1 = scmp.eq.s32.totalorder %s579_s18, 0 }
   0x9   : > { %p896_p2 = scmp.eq.s32.totalorder %s579_s18, 15  ;;  %p126_p3 = scmp.eq.s32.totalorder %s580_s19, 15 }
   0xa   : > { %p902_p4 = por %p892_p1, %p54_p0  ;;  %p581_p5 = scmp.ge.s32.totalorder %s834_s17, 1 }
   0xb   : > { %p907_p6 = por %p126_p3, %p54_p0  ;;  %p133_p7 = scmp.lt.s32.totalorder %s834_s17, 17 }
   0xc   : > { %s145_s26 = sshll.u32 %s1084_s1, 4  ;;  %s836_s28 = smov [#allocation5]   ;;  %s146_s26 = int_to_ptr.hbm [resolvable:$true] %s145_s26 }
   0xd   : > { %p915_p8 = pnand %p581_p5, %p133_p7  ;;  %s147_s29 = sshll.u32 %s836_s28, 4  ;;  %s148_s29 = int_to_ptr.vmem [resolvable:$true] %s147_s29 }
   0xe   : > { %s32_s30 = sadd.s32 1, %s830_s16  ;;  %s41_s4 = sadd.s32 1, %s822_s14 }
   0xf   : > { %p620_p9 = pneg %p915_p8  ;;  %p34_p11 = scmp.ge.s32.totalorder %s32_s30, 16 }
  0x10   : > { %p48_p12 = scmp.ne.s32.totalorder %s822_s14, %s818_s13  ;;  %p49_p13 = scmp.eq.s32.totalorder %s834_s17, 0 }
  0x11   : > { %p621_p10 = pnand %p620_p9, %p892_p1  ;;  %s1100_s30 = smov (%p34_p11, %s32_s30), 0 }
  0x12   : > { %p930_p0 = por %p49_p13, %p48_p12  ;;  %p936_p3 = por %p896_p2, %p48_p12 }
  0x13   : > { %623 = dma.hbm_to_vmem [thread:$0]  (!%p621_p10), %s146_s26, 64, %s148_s29, [#allocation6]  }
  0x14   : > { %s36_s7 = ssub.s32 %s830_s16, %s1100_s30  ;;  %p633_p5 = scmp.lt.s32.totalorder %s834_s17, 16 }
  0x15   : > { %p39_p7 = scmp.eq.s32.totalorder %s36_s7, 0  ;;  %s161_s8 = sand.u32 1, %s822_s14  }
  0x16   : > { %s584_s9 = sshll.u32 %s161_s8, 3  ;;  %s608_s11 = sshll.u32 %s830_s16, 3 }
  0x17   : > { %s945_s10 = scalar_select %p39_p7, %s822_s14, %s41_s4  }
  0x18   : > { %s172_s24 = scalar_lea.hbm %s1083_s0, %s608_s11  ;;  %s165_s25 = scalar_lea.vmem [#allocation2], %s584_s9 }
  0x19   : > { %s176_s26 = sshll.u32 %s165_s25, 4  ;;  %s174_s21 = sshll.u32 %s172_s24, 4  ;;  %s177_s26 = int_to_ptr.vmem [resolvable:$true] %s176_s26  ;;  %s175_s21 = int_to_ptr.hbm [resolvable:$true] %s174_s21 }
  0x1a   : > { %p625_p2 = pnand %p633_p5, %p930_p0  ;;  %s162_s28 = scalar_lea.sflag [#allocation3], %s161_s8 }
  0x1b   : > { %185 = sbr.rel (%p915_p8) target bundleno = 520 (0x208), region = 32  ;;  %s956_s29 = sand.u32 (!%p915_p8), 1, %s818_s13  }
  0x1c   : > { %627 = dma.hbm_to_vmem [thread:$0]  (!%p625_p2), %s175_s21, 128, %s177_s26, %s162_s28  }
  0x1d   : > { %s588_s4 = sshll.u32 (!%p915_p8), %s956_s29, 3  ;;  %s188_s7 = scalar_lea.sflag (!%p915_p8), [#allocation3], %s956_s29 }
  0x1e   : > { %s191_s9 = scalar_lea.vmem (!%p915_p8), [#allocation2], %s588_s4 }
  0x20   : > { %801 = dma.done.wait (%p902_p4), %s188_s7, 128  }
  0x21   : > { %803 = vsyncadd (%p902_p4), %s188_s7, 4294967168 }
  0x22   : > { %805 = dma.done.wait (%p892_p1), [#allocation6], 64  }
  0x23   : > { %807 = vsyncadd (%p892_p1), [#allocation6], 4294967232  ;;  %v226_v0 = vld [vmem:[%s191_s9] sm:$0xff]  ;;  %v235_v1 = vld [vmem:[#allocation5] sm:$0xf]  ;;  %vm314_vm0 = vcmask 1041408   ;;  %s488_s11 = scalar_lea.hbm %s1086_s3, %s826_s15 }
  0x24   : > { %228 = vst [vmem:[#allocation1] ss:$2 sm:$0xff] %v226_v0  ;;  %v236_v2 = vpack.c.bf16 %v235_v1, %v235_v1  ;;  %vm265_vm1 = vcmask 31744   ;;  %v995_v37 = vld [vmem:[%s1085_s2] ss:$0 sm:$0xff]  ;;  %s1027_s27 = scalar_lea.vmem [#allocation7], %s956_s29 }
  0x25   : > { %s490_s18 = sshll.u32 %s1027_s27, 4  ;;  %s492_s19 = sshll.u32 %s488_s11, 4  ;;  %s491_s18 = int_to_ptr.vmem [resolvable:$true] %s490_s18  ;;  %s493_s19 = int_to_ptr.hbm [resolvable:$true] %s492_s19 }
  0x26   : > { %v316_v3 = vsel %vm314_vm0, %v236_v2, 0  ;;  %s480_s24 = scalar_lea.sflag [#allocation4], %s956_s29  ;;  %s762_s25 = sshra.s32 %s493_s19, 4  ;;  %s763_s25 = int_to_ptr.hbm [resolvable:$true] %s762_s25 }
  0x27   : > { %325 = vmatpush.bf16.msra.mxu0 %v316_v3  ;;  %610 = vmatpush.bf16.msra.mxu2 %v316_v3  ;;  %s764_s26 = scalar_lea.hbm %s763_s25, 1  ;;  %s768_s15 = scalar_lea.hbm %s1086_s3, 16 }
  0x28   : > { %609 = vmatpush.bf16.msra.mxu1 %v316_v3  ;;  %611 = vmatpush.bf16.msra.mxu3 %v316_v3  ;;  %p765_p1 = scmp.ne.s32.totalorder %s763_s25, %s764_s26  ;;  %p769_p9 = scmp.lt.s32.totalorder %s763_s25, %s1086_s3 }
  0x29   : > { %p770_p10 = scmp.lt.s32.totalorder %s768_s15, %s764_s26 }
  0x2a   : > { %p766_p4 = pnand %p765_p1, %p936_p3 }
  0x2b   : > { %v229_v4 = vld.sshfl [vmem:[#allocation1] sm:$0xff pattern:$0x75316420]  ;;  %v230_v5 = vld.sshfl [vmem:[#allocation1 + $0x8] sm:$0xff pattern:$0x75316420]  ;;  %p771_p11 = por %p770_p10, %p769_p9 }
  0x2c   : > { %v233_v6 = vpack.c.bf16 %v229_v4, %v229_v4  ;;  %v234_v7 = vpack.c.bf16 %v230_v5, %v230_v5  ;;  %p767_p8 = pneg %p766_p4 }
  0x2e   : > { %241 = vxpose.binary.xlu0.c.b16.start.end [1/2] (short) %v234_v7, %v233_v6, 128  ;;  %p772_p12 = pnand %p771_p11, %p767_p8 }
  0xda   : > { %v249_v8 = vpop.trf.xlu0 }
  0xdb   : > { %590 = vmatmul.msk.bf16.vlgmr.msra.gmra.mxu0 %vm265_vm1, %v249_v8 }
  0xe2   : > { %v250_v9 = vpop.trf.xlu0 }
  0xe3   : > { %598 = vmatmul.msk.bf16.vlgmr.msra.gmra.mxu2 %vm265_vm1, %v250_v9 }
  0xea   : > { %v251_v10 = vpop.trf.xlu0 }
  0xeb   : > { %591 = vmatmul.msk.bf16.gmra.mxu0 %vm265_vm1, %v251_v10 }
  0xf2   : > { %v252_v11 = vpop.trf.xlu0 }
  0xf3   : > { %599 = vmatmul.msk.bf16.gmra.mxu2 %vm265_vm1, %v252_v11 }
  0xfa   : > { %v253_v12 = vpop.trf.xlu0 }
  0xfb   : > { %592 = vmatmul.msk.bf16.gmra.mxu0 %vm265_vm1, %v253_v12 }
 0x102   : > { %v254_v13 = vpop.trf.xlu0 }
 0x103   : > { %600 = vmatmul.msk.bf16.gmra.mxu2 %vm265_vm1, %v254_v13 }
 0x10a   : > { %v255_v14 = vpop.trf.xlu0 }
 0x10b   : > { %593 = vmatmul.msk.bf16.gmra.mxu0 %vm265_vm1, %v255_v14 }
 0x112   : > { %v256_v15 = vpop.trf.xlu0 }
 0x113   : > { %601 = vmatmul.msk.bf16.gmra.mxu2 %vm265_vm1, %v256_v15 }
 0x11a   : > { %v257_v16 = vpop.trf.xlu0 }
 0x11b   : > { %594 = vmatmul.msk.bf16.vlgmr.msra.gmra.mxu1 %vm265_vm1, %v257_v16 }
 0x122   : > { %v258_v17 = vpop.trf.xlu0 }
 0x123   : > { %602 = vmatmul.msk.bf16.vlgmr.msra.gmra.mxu3 %vm265_vm1, %v258_v17 }
 0x12a   : > { %v259_v18 = vpop.trf.xlu0 }
 0x12b   : > { %595 = vmatmul.msk.bf16.gmra.mxu1 %vm265_vm1, %v259_v18 }
 0x132   : > { %v260_v19 = vpop.trf.xlu0 }
 0x133   : > { %603 = vmatmul.msk.bf16.gmra.mxu3 %vm265_vm1, %v260_v19 }
 0x13a   : > { %v261_v20 = vpop.trf.xlu0 }
 0x13b   : > { %596 = vmatmul.msk.bf16.gmra.mxu1 %vm265_vm1, %v261_v20 }
 0x142   : > { %v262_v21 = vpop.trf.xlu0 }
 0x143   : > { %604 = vmatmul.msk.bf16.gmra.mxu3 %vm265_vm1, %v262_v21 }
 0x14a   : > { %v263_v22 = vpop.trf.xlu0 }
 0x14b   : > { %597 = vmatmul.msk.bf16.gmra.mxu1 %vm265_vm1, %v263_v22 }
 0x152   : > { %v264_v23 = vpop.trf.xlu0 }
 0x153   : > { %605 = vmatmul.msk.bf16.gmra.mxu3 %vm265_vm1, %v264_v23 }
 0x158   : > { %v327_v24 = vpop.f32.mrf.mxu0 }
 0x159   : > { %v328_v42 = vadd.f32 %v995_v37, %v327_v24 }
 0x15b   : > { %v407_v47 = vmax.f32 %v328_v42, 0.0 }
 0x160   : > { %v329_v25 = vpop.f32.mrf.mxu0 }
 0x161   : > { %v330_v40 = vadd.f32 %v995_v37, %v329_v25 }
 0x163   : > { %v408_v45 = vmax.f32 %v330_v40, 0.0 }
 0x165   : > { %v440_v51 = vadd.f32 %v408_v45, %v407_v47 }
 0x166   : > { %v984_v28 = vpop.f32.mrf.mxu2 }
 0x168   : > { %v332_v26 = vpop.f32.mrf.mxu0 }
 0x169   : > { %v333_v43 = vadd.f32 %v995_v37, %v332_v26 }
 0x16b   : > { %v409_v48 = vmax.f32 %v333_v43, 0.0 }
 0x16d   : > { %v441_v55 = vadd.f32 %v440_v51, %v409_v48 }
 0x16e   : > { %v986_v31 = vpop.f32.mrf.mxu2 }
 0x170   : > { %v334_v27 = vpop.f32.mrf.mxu0 }
 0x171   : > { %v335_v46 = vadd.f32 %v995_v37, %v334_v27 }
 0x173   : > { %v410_v52 = vmax.f32 %v335_v46, 0.0 }
 0x175   : > { %v442_v59 = vadd.f32 %v441_v55, %v410_v52  ;;  %v837_v55 = vmov 0.0  }
 0x176   : > { %v990_v36 = vpop.f32.mrf.mxu2  ;;  %225 = vst [vmem:[%s1027_s27] sm:$0x1] %v837_v55 }
 0x177   : > { %v373_v45 = vadd.f32 %v995_v37, %v990_v36 }
 0x178   : > { %v337_v30 = vpop.f32.mrf.mxu0 }
 0x179   : > { %v338_v49 = vadd.f32 %v995_v37, %v337_v30 }
 0x17b   : > { %v411_v56 = vmax.f32 %v338_v49, 0.0 }
 0x17d   : > { %v443_v63 = vadd.f32 %v442_v59, %v411_v56 }
 0x17e   : > { %v374_v44 = vpop.f32.mrf.mxu2 }
 0x17f   : > { %v375_v48 = vadd.f32 %v995_v37, %v374_v44 }
 0x180   : > { %v339_v33 = vpop.f32.mrf.mxu0 }
 0x181   : > { %v340_v53 = vadd.f32 %v995_v37, %v339_v33 }
 0x183   : > { %v412_v60 = vmax.f32 %v340_v53, 0.0  ;;  %v426_v53 = vmax.f32 %v375_v48, 0.0 }
 0x185   : > { %v444_v3 = vadd.f32 %v443_v63, %v412_v60 }
 0x186   : > { %v377_v62 = vpop.f32.mrf.mxu2 }
 0x188   : > { %v342_v38 = vpop.f32.mrf.mxu0 }
 0x189   : > { %v343_v57 = vadd.f32 %v995_v37, %v342_v38 }
 0x18b   : > { %v413_v0 = vmax.f32 %v343_v57, 0.0 }
 0x18d   : > { %v445_v6 = vadd.f32 %v444_v3, %v413_v0 }
 0x18e   : > { %v379_v16 = vpop.f32.mrf.mxu2 }
 0x190   : > { %v344_v54 = vpop.f32.mrf.mxu0 }
 0x191   : > { %v345_v61 = vadd.f32 %v995_v37, %v344_v54 }
 0x193   : > { %v414_v4 = vmax.f32 %v345_v61, 0.0 }
 0x195   : > { %v446_v9 = vadd.f32 %v445_v6, %v414_v4 }
 0x196   : > { %v382_v38 = vpop.f32.mrf.mxu2 }
 0x197   : > { %v383_v57 = vadd.f32 %v995_v37, %v382_v38 }
 0x198   : > { %v347_v29 = vpop.f32.mrf.mxu1 }
 0x199   : > { %v348_v1 = vadd.f32 %v995_v37, %v347_v29 }
 0x19b   : > { %v415_v7 = vmax.f32 %v348_v1, 0.0 }
 0x19d   : > { %v447_v13 = vadd.f32 %v446_v9, %v415_v7 }
 0x19e   : > { %v384_v36 = vpop.f32.mrf.mxu2 }
 0x19f   : > { %v385_v60 = vadd.f32 %v995_v37, %v384_v36 }
 0x1a0   : > { %v349_v32 = vpop.f32.mrf.mxu1 }
 0x1a1   : > { %v350_v5 = vadd.f32 %v995_v37, %v349_v32  ;;  %v368_v32 = vadd.f32 %v995_v37, %v984_v28  ;;  %v425_v28 = vmax.f32 %v373_v45, 0.0 }
 0x1a3   : > { %v416_v10 = vmax.f32 %v350_v5, 0.0  ;;  %v423_v43 = vmax.f32 %v368_v32, 0.0 }
 0x1a5   : > { %v448_v18 = vadd.f32 %v447_v13, %v416_v10 }
 0x1a6   : > { %v988_v34 = vpop.f32.mrf.mxu3 }
 0x1a7   : > { %v388_v63 = vadd.f32 %v995_v37, %v988_v34 }
 0x1a8   : > { %v352_v35 = vpop.f32.mrf.mxu1 }
 0x1a9   : > { %v353_v8 = vadd.f32 %v995_v37, %v352_v35  ;;  %v431_v5 = vmax.f32 %v388_v63, 0.0 }
 0x1ab   : > { %v417_v14 = vmax.f32 %v353_v8, 0.0 }
 0x1ad   : > { %v449_v21 = vadd.f32 %v448_v18, %v417_v14 }
 0x1ae   : > { %v998_v41 = vpop.f32.mrf.mxu3 }
 0x1af   : > { %v390_v3 = vadd.f32 %v995_v37, %v998_v41 }
 0x1b0   : > { %v354_v39 = vpop.f32.mrf.mxu1 }
 0x1b1   : > { %v355_v11 = vadd.f32 %v995_v37, %v354_v39  ;;  %v370_v39 = vadd.f32 %v995_v37, %v986_v31  ;;  %v380_v31 = vadd.f32 %v995_v37, %v379_v16  ;;  %v432_v8 = vmax.f32 %v390_v3, 0.0 }
 0x1b3   : > { %v418_v19 = vmax.f32 %v355_v11, 0.0  ;;  %v424_v47 = vmax.f32 %v370_v39, 0.0  ;;  %v428_v59 = vmax.f32 %v380_v31, 0.0 }
 0x1b5   : > { %v450_v24 = vadd.f32 %v449_v21, %v418_v19 }
 0x1b6   : > { %v1006_v58 = vpop.f32.mrf.mxu3 }
 0x1b7   : > { %v393_v6 = vadd.f32 %v995_v37, %v1006_v58 }
 0x1b8   : > { %v357_v50 = vpop.f32.mrf.mxu1 }
 0x1b9   : > { %v358_v15 = vadd.f32 %v995_v37, %v357_v50  ;;  %v378_v50 = vadd.f32 %v995_v37, %v377_v62  ;;  %v429_v62 = vmax.f32 %v383_v57, 0.0  ;;  %v433_v11 = vmax.f32 %v393_v6, 0.0 }
 0x1bb   : > { %v419_v22 = vmax.f32 %v358_v15, 0.0  ;;  %v427_v56 = vmax.f32 %v378_v50, 0.0 }
 0x1bd   : > { %v451_v26 = vadd.f32 %v450_v24, %v419_v22 }
 0x1be   : > { %v394_v12 = vpop.f32.mrf.mxu3 }
 0x1bf   : > { %v395_v9 = vadd.f32 %v995_v37, %v394_v12 }
 0x1c0   : > { %v359_v2 = vpop.f32.mrf.mxu1 }
 0x1c1   : > { %v360_v20 = vadd.f32 %v995_v37, %v359_v2  ;;  %v430_v2 = vmax.f32 %v385_v60, 0.0  ;;  %v434_v14 = vmax.f32 %v395_v9, 0.0 }
 0x1c3   : > { %v420_v25 = vmax.f32 %v360_v20, 0.0 }
 0x1c5   : > { %v452_v33 = vadd.f32 %v451_v26, %v420_v25 }
 0x1c6   : > { %v397_v29 = vpop.f32.mrf.mxu3 }
 0x1c7   : > { %v398_v13 = vadd.f32 %v995_v37, %v397_v29 }
 0x1c8   : > { %v362_v17 = vpop.f32.mrf.mxu1 }
 0x1c9   : > { %v363_v23 = vadd.f32 %v995_v37, %v362_v17  ;;  %v435_v41 = vmax.f32 %v398_v13, 0.0 }
 0x1cb   : > { %v421_v27 = vmax.f32 %v363_v23, 0.0 }
 0x1cd   : > { %v453_v40 = vadd.f32 %v452_v33, %v421_v27  ;;  %v439_v33 = vld [vmem:[%s1027_s27] sm:$0x1] }
 0x1ce   : > { %v399_v52 = vpop.f32.mrf.mxu3 }
 0x1cf   : > { %v400_v15 = vadd.f32 %v995_v37, %v399_v52 }
 0x1d0   : > { %v364_v30 = vpop.f32.mrf.mxu1 }
 0x1d1   : > { %v365_v35 = vadd.f32 %v995_v37, %v364_v30  ;;  %v436_v19 = vmax.f32 %v400_v15, 0.0 }
 0x1d3   : > { %v422_v42 = vmax.f32 %v365_v35, 0.0 }
 0x1d5   : > { %v454_v46 = vadd.f32 %v453_v40, %v422_v42 }
 0x1d6   : > { %v402_v1 = vpop.f32.mrf.mxu3 }
 0x1d7   : > { %v455_v49 = vadd.f32 %v454_v46, %v423_v43  ;;  %v403_v18 = vadd.f32 %v995_v37, %v402_v1 }
 0x1d9   : > { %v456_v51 = vadd.f32 %v455_v49, %v424_v47  ;;  %v437_v21 = vmax.f32 %v403_v18, 0.0 }
 0x1db   : > { %v457_v54 = vadd.f32 %v456_v51, %v425_v28 }
 0x1dd   : > { %v458_v44 = vadd.f32 %v457_v54, %v426_v53 }
 0x1de   : > { %v404_v17 = vpop.f32.mrf.mxu3 }
 0x1df   : > { %v459_v61 = vadd.f32 %v458_v44, %v427_v56  ;;  %v405_v12 = vadd.f32 %v995_v37, %v404_v17 }
 0x1e1   : > { %v460_v0 = vadd.f32 %v459_v61, %v428_v59  ;;  %v438_v24 = vmax.f32 %v405_v12, 0.0 }
 0x1e3   : > { %v461_v4 = vadd.f32 %v460_v0, %v429_v62 }
 0x1e5   : > { %v462_v7 = vadd.f32 %v461_v4, %v430_v2 }
 0x1e7   : > { %v463_v10 = vadd.f32 %v462_v7, %v431_v5 }
 0x1e9   : > { %v464_v34 = vadd.f32 %v463_v10, %v432_v8 }
 0x1eb   : > { %v465_v16 = vadd.f32 %v464_v34, %v433_v11 }
 0x1ed   : > { %v466_v58 = vadd.f32 %v465_v16, %v434_v14 }
 0x1ef   : > { %v467_v20 = vadd.f32 %v466_v58, %v435_v41 }
 0x1f1   : > { %v468_v22 = vadd.f32 %v467_v20, %v436_v19 }
 0x1f3   : > { %v469_v23 = vadd.f32 %v468_v22, %v437_v21 }
 0x1f5   : > { %v470_v25 = vadd.f32 %v469_v23, %v438_v24 }
 0x1f7   : > { %v471_v26 = vrot.slane %v470_v25, 4 }
 0x1f9   : > { %v472_v27 = vadd.f32 %v471_v26, %v470_v25 }
 0x1fb   : > { %v473_v29 = vrot.slane %v472_v27, 2 }
 0x1fd   : > { %v474_v30 = vadd.f32 %v473_v29, %v472_v27 }
 0x1ff   : > { %v475_v32 = vrot.slane %v474_v30, 1 }
 0x201   : > { %v476_v37 = vadd.f32 %v475_v32, %v474_v30 }
 0x203   : > { %v477_v35 = vadd.f32 %v476_v37, %v439_v33 }
 0x205   : > { %478 = vst [vmem:[%s1027_s27] sm:$0x1] %v477_v35 }
 0x206   : > { %775 = shalt.err (!%p772_p12)
}
 0x207   : > { %618 = dma.vmem_to_hbm [thread:$0]  (%p936_p3), %s491_s18, 16, %s493_s19, %s480_s24  }
 0x208 PF: > { %p635_p13 = scmp.ge.s32.totalorder %s834_s17, 2  ;;  %s504_s29 = sand.u32 1, %s814_s12  }
 0x209   : > { %s505_s9 = scalar_lea.sflag [#allocation4], %s504_s29 }
 0x20a   : > { %p629_p0 = pnand %p635_p13, %p907_p6 }
 0x20c   : > { %p630_p5 = pneg %p629_p0 }
 0x20e   : > { %809 = dma.done.wait (%p630_p5), %s505_s9, 16  }
 0x20f   : > { %811 = vsyncadd (%p630_p5), %s505_s9, 4294967280  ;;  %s20_s17 = sadd.s32 1, %s834_s17   ;;  %s1094_s12 = smov %s818_s13 }
 0x210   : > { %p17_p7 = scmp.ge.s32.totalorder %s20_s17, 18   ;;  %s1095_s13 = smov %s822_s14 }
 0x211   : > { %s1096_s14 = smov %s945_s10  ;;  %s1097_s15 = smov %s830_s16 }
 0x212   : > { %s1098_s16 = smov %s1100_s30  ;;  %19 = sbr.rel (!%p17_p7) target bundleno = 7 (0x7), region = 85 }
 0x217   :  { %510 = vsyncpa [#allocation3], 1 }
 0x218   :  { %512 = vsyncpa [#allocation3 + $0x1], 1 }
 0x219   :  { %513 = vsyncpa [#allocation6], 1 }
 0x21a   :  { %514 = vsyncpa [#allocation4], 1 }
 0x21b   :  { %516 = vsyncpa [#allocation4 + $0x1], 1 }

</bundles_post_ra>
